<compile_context>
chip_gen: v7x
topology: tpu7x:2x2x1
jax: 0.10.0
libtpu: 0.0.40
codegen_flags: <defaults>
</compile_context>

<pallas_src>
import functools
import math

import numpy as np
import jax
import jax.numpy as jnp
from jax.experimental import pallas as pl
from jax.experimental.pallas import tpu as pltpu


def _make_divisible(v, divisor, min_value=None):
    if min_value is None:
        min_value = divisor
    new_v = max(min_value, int(v + divisor / 2) // divisor * divisor)
    if new_v < 0.9 * v:
        new_v += divisor
    return new_v


def _stable_sigmoid(x):
    # Overflow-safe sigmoid; exp lowers to the EUP slot.
    z = jnp.exp(-jnp.abs(x))
    return jnp.where(x >= 0.0, 1.0 / (1.0 + z), z / (1.0 + z))


def _align(v, m):
    return (v + m - 1) // m * m


def _vmem_budget_bytes():
    """Generation-aware VMEM budget (~half of physical per-core VMEM)."""
    cap = None
    try:
        cap = getattr(pltpu.get_tpu_info(), "vmem_capacity_bytes", None)
    except Exception:
        cap = None
    if not cap:
        cap = 64 * 2 ** 20            # conservative default = v7x per-TC VMEM
    return int(min(cap // 2, 64 * 2 ** 20))


def _fold_factor(c, hw):
    """Smallest S so rows = C*S fill 8 sublanes while lanes stay 128-dense."""
    base = 8 // math.gcd(c, 8)
    for mult in (1, 2, 4, 8):
        s = base * mult
        if s <= hw and hw % s == 0 and (hw // s) % 128 == 0:
            return s
    return 1


# --------------------------- fused single-pass kernel ------------------------

def _se_fused_kernel(x_ref, w1r_ref, b1_ref, w2r_ref, b2r_ref, o_ref, *, inv_hw):
    """One image per grid step: pool + fc1/ReLU/fc2/sigmoid + scale, fused.

    x_ref  : (1, R, L)  one image slab, R = C*S rows (channel-major), L = HW/S
    w1r_ref: (R, SQ)    fc1 weight rows, channel row repeated S times
    b1_ref : (1, SQ)
    w2r_ref: (R, SQ)    fc2 weight (transposed) rows, repeated S times
    b2r_ref: (R, 1)
    o_ref  : (1, R, L)
    """
    x = x_ref[0]                                                  # (R, L)
    # Per-row spatial mean contribution (lane reduce -> XLU).
    row_means = jnp.sum(x, axis=-1, keepdims=True) * inv_hw       # (R, 1)
    # fc1 + ReLU:  z_q = sum_r w1r[r,q] * row_means[r] + b1_q   (sublane reduce)
    z = jnp.sum(w1r_ref[...] * row_means, axis=0, keepdims=True) + b1_ref[...]
    z = jnp.maximum(z, 0.0)                                       # (1, SQ)
    # fc2 (per-row gate logit):  g_r = sum_q w2r[r,q] * z_q + b2r[r]
    g = jnp.sum(w2r_ref[...] * z, axis=1, keepdims=True) + b2r_ref[...]  # (R, 1)
    gate = _stable_sigmoid(g)                                     # (R, 1)
    o_ref[0] = x * gate                                           # lane-dense


def _forward_fused(x3, params, B, C, HW, budget):
    w1, b1 = params["w1"], params["b1"]            # (C, SQ), (1, SQ)
    w2, b2 = params["w2"], params["b2"]            # (SQ, C), (1, C)
    SQ = w1.shape[1]

    S = _fold_factor(C, HW)
    R, L = C * S, HW // S
    xr = x3.reshape(B, R, L)                       # free view: contiguous

    # Row-expanded weights (tiny; computed outside the kernel).
    w1r = jnp.repeat(w1, S, axis=0)                # (R, SQ), row r <-> channel r//S
    b1r = b1.reshape(1, SQ)
    w2r = jnp.repeat(w2.T, S, axis=0)              # (R, SQ)
    b2r = jnp.repeat(b2.reshape(C, 1), S, axis=0)  # (R, 1)

    out = pl.pallas_call(
        functools.partial(_se_fused_kernel, inv_hw=1.0 / HW),
        out_shape=jax.ShapeDtypeStruct((B, R, L), jnp.float32),
        grid=(B,),
        in_specs=[
            pl.BlockSpec((1, R, L), lambda b: (b, 0, 0)),          # x slab
            pl.BlockSpec((R, SQ), lambda b: (0, 0)),               # w1 rows
            pl.BlockSpec((1, SQ), lambda b: (0, 0)),               # b1
            pl.BlockSpec((R, SQ), lambda b: (0, 0)),               # w2 rows
            pl.BlockSpec((R, 1), lambda b: (0, 0)),                # b2 rows
        ],
        out_specs=pl.BlockSpec((1, R, L), lambda b: (b, 0, 0)),
        compiler_params=pltpu.CompilerParams(
            dimension_semantics=("parallel",),
            vmem_limit_bytes=budget),
    )(xr, w1r, b1r, w2r, b2r)
    return out


# --------------------- streaming fallback (slab > VMEM) ----------------------

def _se_pool_kernel(x_ref, sum_ref, acc_ref):
    """Accumulate per-channel spatial sums across HW tiles."""
    k = pl.program_id(1)

    @pl.when(k == 0)
    def _init():
        acc_ref[...] = jnp.zeros_like(acc_ref)

    acc_ref[...] += jnp.sum(x_ref[...], axis=2, keepdims=True)

    @pl.when(k == pl.num_programs(1) - 1)
    def _finalize():
        sum_ref[...] = acc_ref[...]


def _se_scale_kernel(s_ref, x_ref, o_ref):
    """out = x * gate, broadcast over the lane-dense HW axis."""
    o_ref[...] = x_ref[...] * s_ref[...]


def _pick_hw_tile(hw, c, budget_bytes):
    """Largest multiple-of-128 divisor of hw; multi-MiB target (budget-aware)."""
    if hw % 128 != 0:
        return hw
    target = max(1 << 20, budget_bytes // 8)       # ~4 MiB on v7x, ~8 MiB v5e/v6e
    cap = (target // (4 * max(c, 1))) // 128 * 128
    cap = max(128, min(cap, hw))
    best, t = 128, 128
    while t <= cap:
        if hw % t == 0:
            best = t
        t += 128
    return best


def _forward_streaming(x3, params, B, C, HW, budget, tile_hw=None):
    w1, b1 = params["w1"], params["b1"]
    w2, b2 = params["w2"], params["b2"]

    if tile_hw is None:
        tile_hw = _pick_hw_tile(HW, C, budget)
    assert HW % tile_hw == 0, (HW, tile_hw)
    n_hw = HW // tile_hw

    # Pass 1: per-channel spatial sums (pure streaming, no weights in kernel).
    sums = pl.pallas_call(
        _se_pool_kernel,
        out_shape=jax.ShapeDtypeStruct((B, C, 1), jnp.float32),
        grid=(B, n_hw),
        in_specs=[pl.BlockSpec((1, C, tile_hw), lambda b, k: (b, 0, k))],
        out_specs=pl.BlockSpec((1, C, 1), lambda b, k: (b, 0, 0)),
        scratch_shapes=[pltpu.VMEM((1, C, 1), jnp.float32)],
        compiler_params=pltpu.CompilerParams(
            dimension_semantics=("parallel", "arbitrary"),
            vmem_limit_bytes=budget),
    )(x3)

    # Hoisted FCs: batched over all B rows in plain JAX (tiny).
    pooled = sums[:, :, 0] * (1.0 / HW)                            # (B, C)
    z = jnp.maximum(pooled @ w1 + b1, 0.0)
    gate = jax.nn.sigmoid(z @ w2 + b2)                             # (B, C)
    gate3 = gate[:, :, None]                                       # (B, C, 1)

    # Pass 2: lane-dense broadcast multiply, fully parallel grid.
    out3 = pl.pallas_call(
        _se_scale_kernel,
        out_shape=jax.ShapeDtypeStruct((B, C, HW), jnp.float32),
        grid=(B, n_hw),
        in_specs=[
            pl.BlockSpec((1, C, 1), lambda b, k: (b, 0, 0)),       # gate
            pl.BlockSpec((1, C, tile_hw), lambda b, k: (b, 0, k)),  # x
        ],
        out_specs=pl.BlockSpec((1, C, tile_hw), lambda b, k: (b, 0, k)),
        compiler_params=pltpu.CompilerParams(
            dimension_semantics=("parallel", "parallel"),
            vmem_limit_bytes=budget),
    )(gate3, x3)
    return out3


# ------------------------------ wrapper / dispatch ---------------------------

def squeeze_excitation_forward(x_nchw, params, *, force_streaming=False,
                               tile_hw=None):
    """Forward pass of SqueezeExcitation: sigmoid(fc2(relu(fc1(avgpool(x))))) * x."""
    B, C, H, W = x_nchw.shape
    HW = H * W
    x3 = x_nchw.reshape(B, C, HW).astype(jnp.float32)

    budget = _vmem_budget_bytes()

    # Fused path is usable when double-buffered in+out slabs fit the budget.
    S = _fold_factor(C, HW)
    R, L = C * S, HW // S
    padded_slab = _align(R, 8) * _align(L, 128) * 4
    fused_ok = (4 * padded_slab + (1 << 20)) <= budget

    if fused_ok and not force_streaming:
        out = _forward_fused(x3, params, B, C, HW, budget)
    else:
        out = _forward_streaming(x3, params, B, C, HW, budget, tile_hw=tile_hw)
    return out.reshape(B, C, H, W)


# ------------------------------ parameters -----------------------------------

def init_se_params(key, channels, squeeze_factor=4):
    """Matches nn.Conv2d default-style init; weights stored as (Cin, Cout)."""
    sq = _make_divisible(channels // squeeze_factor, 8)
    k1, k2, k3, k4 = jax.random.split(key, 4)

    def u(k, shape, fan_in):
        bound = 1.0 / np.sqrt(fan_in)
        return jax.random.uniform(k, shape, jnp.float32, -bound, bound)

    return {
        "w1": u(k1, (channels, sq), channels),   # fc1.weight^T
        "b1": u(k2, (1, sq), channels),          # fc1.bias
        "w2": u(k3, (sq, channels), sq),         # fc2.weight^T
        "b2": u(k4, (1, channels), sq),          # fc2.bias
    }


# -------------------------------- main ---------------------------------------

if __name__ == "__main__":
    B, C, H, W = 2, 4, 16, 16

    key = jax.random.PRNGKey(0)
    kx, kp = jax.random.split(key)
    x = jax.random.normal(kx, (B, C, H, W), dtype=jnp.float32)
    params = init_se_params(kp, C, squeeze_factor=4)

    # Pure-JAX reference (same math as the PyTorch module).
    def ref(x, p):
        pooled = jnp.mean(x, axis=(2, 3))                          # (B, C)
        z = jnp.maximum(pooled @ p["w1"] + p["b1"], 0.0)
        s = jax.nn.sigmoid(z @ p["w2"] + p["b2"])                  # (B, C)
        return x * s[:, :, None, None]

    expected = ref(x, params)

    # Fused single-pass path (default at these shapes).
    out = jax.block_until_ready(squeeze_excitation_forward(x, params))
    assert out.shape == (B, C, H, W), out.shape
    assert bool(jnp.all(jnp.isfinite(out)))
    assert bool(jnp.allclose(out, expected, atol=1e-5, rtol=1e-5))

    # Streaming fallback path (forced), with multi-tile HW accumulation.
    out_stream = jax.block_until_ready(
        squeeze_excitation_forward(x, params, force_streaming=True, tile_hw=128))
    assert bool(jnp.allclose(out_stream, expected, atol=1e-5, rtol=1e-5))

    print("KERNEL_OK")
</pallas_src>

<mosaic_0001>
module attributes {stable_mosaic.version = 11 : i64} {
  func.func @_se_fused_kernel(%arg0: i32, %arg1: memref<1x8x128xf32, #tpu.memory_space<vmem>>, %arg2: memref<8x8xf32, #tpu.memory_space<vmem>>, %arg3: memref<1x8xf32, #tpu.memory_space<vmem>>, %arg4: memref<8x8xf32, #tpu.memory_space<vmem>>, %arg5: memref<8x1xf32, #tpu.memory_space<vmem>>, %arg6: memref<1x8x128xf32, #tpu.memory_space<vmem>>) attributes {dimension_semantics = [#tpu.dimension_semantics<parallel>], iteration_bounds = array<i64: 2>, scalar_prefetch = 0 : i64, scratch_operands = 0 : i64, tpu.core_type = #tpu.core_type<tc>, window_params = [{transform_indices = @transform_0, window_bounds = array<i64: 1, 8, 128>}, {pipeline_mode = #tpu.pipeline_mode<synchronous>, transform_indices = @transform_1, window_bounds = array<i64: 8, 8>}, {pipeline_mode = #tpu.pipeline_mode<synchronous>, transform_indices = @transform_2, window_bounds = array<i64: 1, 8>}, {pipeline_mode = #tpu.pipeline_mode<synchronous>, transform_indices = @transform_3, window_bounds = array<i64: 8, 8>}, {pipeline_mode = #tpu.pipeline_mode<synchronous>, transform_indices = @transform_4, window_bounds = array<i64: 8, 1>}, {transform_indices = @transform_5, window_bounds = array<i64: 1, 8, 128>}]} {
    %c0 = arith.constant 0 : index
    %c0_0 = arith.constant 0 : index
    %c0_1 = arith.constant 0 : index
    %0 = vector.load %arg1[%c0, %c0_0, %c0_1] : memref<1x8x128xf32, #tpu.memory_space<vmem>>, vector<1x8x128xf32>
    %1 = vector.shape_cast %0 : vector<1x8x128xf32> to vector<8x128xf32>
    %cst = arith.constant dense<0.000000e+00> : vector<8xf32>
    %2 = vector.multi_reduction <add>, %1, %cst [1] : vector<8x128xf32> to vector<8xf32>
    %3 = vector.shape_cast %2 : vector<8xf32> to vector<8x1xf32>
    %cst_2 = arith.constant 3.906250e-03 : f32
    %4 = vector.broadcast %cst_2 : f32 to vector<8x1xf32>
    %5 = arith.mulf %3, %4 : vector<8x1xf32>
    %c0_3 = arith.constant 0 : index
    %c0_4 = arith.constant 0 : index
    %6 = vector.load %arg2[%c0_3, %c0_4] : memref<8x8xf32, #tpu.memory_space<vmem>>, vector<8x8xf32>
    %7 = vector.broadcast %5 : vector<8x1xf32> to vector<8x8xf32>
    %8 = arith.mulf %6, %7 : vector<8x8xf32>
    %cst_5 = arith.constant dense<0.000000e+00> : vector<8xf32>
    %9 = vector.multi_reduction <add>, %8, %cst_5 [0] : vector<8x8xf32> to vector<8xf32>
    %10 = vector.shape_cast %9 : vector<8xf32> to vector<1x8xf32>
    %c0_6 = arith.constant 0 : index
    %c0_7 = arith.constant 0 : index
    %11 = vector.load %arg3[%c0_6, %c0_7] : memref<1x8xf32, #tpu.memory_space<vmem>>, vector<1x8xf32>
    %12 = arith.addf %10, %11 : vector<1x8xf32>
    %cst_8 = arith.constant 0.000000e+00 : f32
    %13 = vector.broadcast %cst_8 : f32 to vector<1x8xf32>
    %14 = arith.maximumf %12, %13 : vector<1x8xf32>
    %c0_9 = arith.constant 0 : index
    %c0_10 = arith.constant 0 : index
    %15 = vector.load %arg4[%c0_9, %c0_10] : memref<8x8xf32, #tpu.memory_space<vmem>>, vector<8x8xf32>
    %16 = vector.broadcast %14 : vector<1x8xf32> to vector<8x8xf32>
    %17 = arith.mulf %15, %16 : vector<8x8xf32>
    %cst_11 = arith.constant dense<0.000000e+00> : vector<8xf32>
    %18 = vector.multi_reduction <add>, %17, %cst_11 [1] : vector<8x8xf32> to vector<8xf32>
    %19 = vector.shape_cast %18 : vector<8xf32> to vector<8x1xf32>
    %c0_12 = arith.constant 0 : index
    %c0_13 = arith.constant 0 : index
    %20 = vector.load %arg5[%c0_12, %c0_13] : memref<8x1xf32, #tpu.memory_space<vmem>>, vector<8x1xf32>
    %21 = arith.addf %19, %20 : vector<8x1xf32>
    %22 = math.absf %21 : vector<8x1xf32>
    %cst_14 = arith.constant 0.000000e+00 : f32
    %23 = vector.broadcast %cst_14 : f32 to vector<8x1xf32>
    %24 = arith.subf %23, %22 : vector<8x1xf32>
    %25 = math.exp %24 : vector<8x1xf32>
    %cst_15 = arith.constant 0.000000e+00 : f32
    %26 = vector.broadcast %cst_15 : f32 to vector<8x1xf32>
    %27 = arith.cmpf oge, %21, %26 : vector<8x1xf32>
    %cst_16 = arith.constant 1.000000e+00 : f32
    %28 = vector.broadcast %cst_16 : f32 to vector<8x1xf32>
    %29 = arith.addf %28, %25 : vector<8x1xf32>
    %cst_17 = arith.constant 1.000000e+00 : f32
    %30 = vector.broadcast %cst_17 : f32 to vector<8x1xf32>
    %31 = arith.divf %30, %29 : vector<8x1xf32>
    %cst_18 = arith.constant 1.000000e+00 : f32
    %32 = vector.broadcast %cst_18 : f32 to vector<8x1xf32>
    %33 = arith.addf %32, %25 : vector<8x1xf32>
    %34 = arith.divf %25, %33 : vector<8x1xf32>
    %35 = arith.select %27, %31, %34 : vector<8x1xi1>, vector<8x1xf32>
    %36 = vector.broadcast %35 : vector<8x1xf32> to vector<8x128xf32>
    %37 = arith.mulf %1, %36 : vector<8x128xf32>
    %c0_19 = arith.constant 0 : index
    %c0_20 = arith.constant 0 : index
    %c0_21 = arith.constant 0 : index
    %38 = vector.load %arg6[%c0_19, %c0_20, %c0_21] : memref<1x8x128xf32, #tpu.memory_space<vmem>>, vector<1x8x128xf32>
    %39 = vector.shape_cast %38 : vector<1x8x128xf32> to vector<8x128xf32>
    %40 = vector.shape_cast %37 : vector<8x128xf32> to vector<1x8x128xf32>
    tpu.vector_store %arg6[%c0_19, %c0_20, %c0_21], %40 {strides = array<i32>} : memref<1x8x128xf32, #tpu.memory_space<vmem>>, vector<1x8x128xf32>,
    return
  }
  func.func @transform_0(%arg0: i32) -> (i32, i32, i32) {
    %c0_i32 = arith.constant 0 : i32
    %c0_i32_0 = arith.constant 0 : i32
    %c0_i32_1 = arith.constant 0 : i32
    return %arg0, %c0_i32, %c0_i32_0 : i32, i32, i32
  }
  func.func @transform_1(%arg0: i32) -> (i32, i32) {
    %c0_i32 = arith.constant 0 : i32
    %c0_i32_0 = arith.constant 0 : i32
    %c0_i32_1 = arith.constant 0 : i32
    return %c0_i32, %c0_i32_0 : i32, i32
  }
  func.func @transform_2(%arg0: i32) -> (i32, i32) {
    %c0_i32 = arith.constant 0 : i32
    %c0_i32_0 = arith.constant 0 : i32
    %c0_i32_1 = arith.constant 0 : i32
    return %c0_i32, %c0_i32_0 : i32, i32
  }
  func.func @transform_3(%arg0: i32) -> (i32, i32) {
    %c0_i32 = arith.constant 0 : i32
    %c0_i32_0 = arith.constant 0 : i32
    %c0_i32_1 = arith.constant 0 : i32
    return %c0_i32, %c0_i32_0 : i32, i32
  }
  func.func @transform_4(%arg0: i32) -> (i32, i32) {
    %c0_i32 = arith.constant 0 : i32
    %c0_i32_0 = arith.constant 0 : i32
    %c0_i32_1 = arith.constant 0 : i32
    return %c0_i32, %c0_i32_0 : i32, i32
  }
  func.func @transform_5(%arg0: i32) -> (i32, i32, i32) {
    %c0_i32 = arith.constant 0 : i32
    %c0_i32_0 = arith.constant 0 : i32
    %c0_i32_1 = arith.constant 0 : i32
    return %arg0, %c0_i32, %c0_i32_0 : i32, i32, i32
  }
}

</mosaic_0001>

<bundles_post_ra>
// kernel: tpu_custom_call.1
= control target key start
LH: loop header
LB: loop body
LE: loop exit
PB: predicated region body
PF: predicated region fallthrough
CT: control target
= control target key end

     0   :  { %10 = vsyncpa [#allocation3], 0  ;;  %s850_s0 = inlined_call_operand.hbm [shape: f32[2,8,128], index: 0, kind: input, shape index: {}]   ;;  %s851_s1 = inlined_call_operand.vmem [shape: f32[8,8], index: 1, kind: input, shape index: {}]   ;;  %s852_s2 = inlined_call_operand.hbm [shape: f32[1,8], index: 2, kind: input, shape index: {}]   ;;  %s853_s3 = inlined_call_operand.vmem [shape: f32[8,8], index: 3, kind: input, shape index: {}]   ;;  %s854_s4 = inlined_call_operand.vmem [shape: f32[8,1], index: 4, kind: input, shape index: {}]   ;;  %s855_s5 = inlined_call_operand.hbm [shape: f32[2,8,128], index: 5, kind: output, shape index: {}]  }
   0x1   :  { %12 = vsyncpa [#allocation3 + $0x1], 0 }
   0x2   :  { %13 = vsyncpa [#allocation6], 0 }
   0x3   :  { %14 = vsyncpa [#allocation4], 0 }
   0x4   :  { %16 = vsyncpa [#allocation4 + $0x1], 0  ;;  %s634_s18 = smov 0   ;;  %s636_s19 = smov 0  }
   0x5   :  { %s638_s20 = smov 0   ;;  %s640_s21 = smov 0  }
   0x6 LB: > { %s655_s22 = sadd.s32 4294967295, %s598_s21   ;;  %s392_s23 = sadd.s32 4294967294, %s598_s21   ;;  %s598_s21 = sphi %s640_s21, %s879_s21   ;;  %s594_s20 = sphi %s638_s20, %s878_s20   ;;  %s590_s19 = sphi %s636_s19, %s877_s19   ;;  %s586_s18 = sphi %s634_s18, %s876_s18  }
   0x7   : > { %p42_p0 = scmp.ne.s32.totalorder %s590_s19, %s586_s18  ;;  %p856_p1 = scmp.eq.s32.totalorder %s655_s22, 0 }
   0x8   : > { %p156_p3 = scmp.eq.s32.totalorder %s392_s23, 1  ;;  %p393_p5 = scmp.ge.s32.totalorder %s598_s21, 1 }
   0x9   : > { %p664_p4 = por %p856_p1, %p42_p0  ;;  %p163_p7 = scmp.lt.s32.totalorder %s598_s21, 3 }
   0xa   : > { %p669_p6 = por %p156_p3, %p42_p0  ;;  %s600_s27 = smov [#allocation5]  }
   0xb   : > { %s859_s24 = scalar_select %p664_p4, 1, 0 }
   0xc   : > { %s860_s25 = scalar_select %p669_p6, 1, 0 }
   0xd   : > { %p674_p8 = pnand %p393_p5, %p163_p7  ;;  %s179_s28 = sshll.u32 %s600_s27, 4  ;;  %s180_s28 = int_to_ptr.vmem [resolvable:$true] %s179_s28 }
   0xe   : > { %s682_s29 = sadd.s32 1, %s598_s21   ;;  %s29_s8 = sadd.s32 1, %s594_s20 }
   0xf   : > { %s861_s26 = scalar_select %p674_p8, 1, 0 }
  0x10   : > { %p414_p10 = pneg %p674_p8  ;;  %s26_s6 = ssub.s32 %s598_s21, %s682_s29 }
  0x11   : > { %p692_p12 = scmp.eq.s32.totalorder %s26_s6, 0  ;;  %s470_s11 = scalar_lea.hbm %s852_s2, 16 }
  0x12   : > { %p686_p11 = pnand %p414_p10, %p856_p1  ;;  %p471_p0 = scmp.ne.s32.totalorder %s852_s2, %s470_s11 }
  0x13   : > { %s863_s7 = scalar_select %p692_p12, 1, 0 }
  0x14   : > { %p472_p3 = pneg %p686_p11  ;;  %p477_p10 = scmp.lt.u32.totalorder %s470_s11, %s852_s2 }
  0x16   : > { %p473_p5 = pnand %p472_p3, %p471_p0 }
  0x18   : > { %p474_p7 = pneg %p473_p5 }
  0x1a   : > { %p479_p9 = pnand %p477_p10, %p474_p7 }
  0x1c   : > { %482 = shalt.err (!%p479_p9)
}
  0x1d   : > { %s483_s16 = scalar_lea.vmem %s180_s28, 16  ;;  %s490_s17 = scalar_lea.vmem %s180_s28, 32 }
  0x1e   : > { %p484_p1 = scmp.ne.s32.totalorder %s180_s28, %s483_s16  ;;  %p491_p6 = scmp.lt.s32.totalorder %s180_s28, %s180_s28 }
  0x1f   : > { %p492_p4 = scmp.lt.s32.totalorder %s490_s17, %s483_s16 }
  0x20   : > { %p486_p2 = pnand %p484_p1, %p472_p3 }
  0x21   : > { %p493_p8 = por %p492_p4, %p491_p6 }
  0x22   : > { %p487_p13 = pneg %p486_p2 }
  0x24   : > { %p494_p12 = pnand %p493_p8, %p487_p13 }
  0x26   : > { %497 = shalt.err (!%p494_p12)
}
  0x27   : > { %417 = dma.hbm_to_vmem [thread:$0]  (!%p686_p11), %s852_s2, 16, %s180_s28, [#allocation6]  }
  0x28   : > { %p864_p1 = scmp.ne.s32.totalorder %s863_s7, 0  ;;  %p37_p2 = scmp.eq.s32.totalorder %s598_s21, 0 }
  0x29   : > { %p865_p4 = scmp.ne.s32.totalorder %s594_s20, %s590_s19  ;;  %p866_p6 = scmp.eq.s32.totalorder %s655_s22, 1 }
  0x2a   : > { %s718_s6 = scalar_select %p864_p1, %s594_s20, %s29_s8  }
  0x2b   : > { %p726_p8 = por %p866_p6, %p865_p4  ;;  %p427_p9 = scmp.lt.s32.totalorder %s598_s21, 2 }
  0x2c   : > { %s196_s9 = sand.u32 1, %s594_s20   ;;  %p868_p12 = pmov %p865_p4 }
  0x2d   : > { %s396_s10 = sshll.u32 %s196_s9, 3  ;;  %s397_s11 = sshll.u32 %s598_s21, 7 }
  0x2e   : > { %p38_p13 = por %p37_p2, %p868_p12  ;;  %s739_s28 = scalar_lea.hbm %s850_s0, %s397_s11 }
  0x2f   : > { %s200_s7 = scalar_lea.vmem [#allocation2], %s396_s10  ;;  %s197_s15 = scalar_lea.sflag [#allocation3], %s196_s9 }
  0x30   : > { %s207_s8 = sshll.u32 %s200_s7, 4  ;;  %p741_p11 = pnand %p427_p9, %p38_p13  ;;  %s745_s8 = int_to_ptr.vmem [resolvable:$true] %s207_s8 }
  0x31   : > { %s498_s16 = scalar_lea.hbm %s739_s28, 128  ;;  %s503_s27 = scalar_lea.hbm %s850_s0, 256 }
  0x32   : > { %p499_p0 = scmp.ne.s32.totalorder %s739_s28, %s498_s16  ;;  %p500_p3 = pneg %p741_p11 }
  0x33   : > { %p504_p10 = scmp.lt.u32.totalorder %s739_s28, %s850_s0  ;;  %p505_p1 = scmp.lt.u32.totalorder %s503_s27, %s498_s16 }
  0x34   : > { %p501_p5 = pnand %p500_p3, %p499_p0  ;;  %p507_p4 = scmp.lt.u32.totalorder %s498_s16, %s739_s28 }
  0x35   : > { %p506_p2 = por %p505_p1, %p504_p10 }
  0x36   : > { %p502_p7 = pneg %p501_p5 }
  0x37   : > { %p508_p6 = por %p507_p4, %p506_p2 }
  0x39   : > { %p509_p9 = pnand %p508_p6, %p502_p7 }
  0x3b   : > { %512 = shalt.err (!%p509_p9)
}
  0x3c   : > { %s513_s9 = scalar_lea.vmem %s745_s8, 128  ;;  %s601_s12 = smov [#allocation2]  }
  0x3d   : > { %p514_p12 = scmp.ne.s32.totalorder %s745_s8, %s513_s9  ;;  %s518_s13 = sshll.u32 %s601_s12, 4  ;;  %s519_s13 = int_to_ptr.vmem [resolvable:$false] %s518_s13 }
  0x3e   : > { %s520_s7 = scalar_lea.vmem %s519_s13, 256  ;;  %p521_p5 = scmp.lt.s32.totalorder %s745_s8, %s519_s13 }
  0x3f   : > { %p516_p13 = pnand %p514_p12, %p500_p3  ;;  %p522_p10 = scmp.lt.s32.totalorder %s520_s7, %s513_s9 }
  0x41   : > { %p517_p0 = pneg %p516_p13  ;;  %p523_p1 = por %p522_p10, %p521_p5 }
  0x43   : > { %p524_p2 = pnand %p523_p1, %p517_p0 }
  0x45   : > { %527 = shalt.err (!%p524_p2)
}
  0x46   : > { %421 = dma.hbm_to_vmem [thread:$0]  (!%p741_p11), %s739_s28, 128, %s745_s8, %s197_s15  }
  0x47   : > { %p870_p7 = scmp.ne.s32.totalorder %s861_s26, 0 }
  0x48   : > { %s775_s16 = sand.u32 (!%p870_p7), 1, %s590_s19   ;;  %p871_p3 = scmp.ne.s32.totalorder (!%p870_p7), %s859_s24, 0 }
  0x49   : > { %216 = sbr.rel (%p870_p7) target bundleno = 574 (0x23e), region = 40  ;;  %s399_s17 = sshll.u32 (!%p870_p7), %s775_s16, 3 }
  0x4a   : > { %s219_s23 = scalar_lea.sflag (!%p870_p7), [#allocation3], %s775_s16  ;;  %s222_s27 = scalar_lea.vmem (!%p870_p7), [#allocation2], %s399_s17 }
  0x50   : > { %573 = dma.done.wait (%p871_p3), %s219_s23, 128  }
  0x51   : > { %575 = vsyncadd (%p871_p3), %s219_s23, 4294967168  ;;  %p872_p11 = scmp.eq.s32.totalorder %s655_s22, 0 }
  0x53   : > { %577 = dma.done.wait (%p872_p11), [#allocation6], 16   ;;  %p873_p4 = pmov %p872_p11 }
  0x54   : > { %v253_v0 = vld [vmem:[%s222_s27] sm:$0xff]  ;;  %vm259_vm0 = vcmask 64512   ;;  %v271_v9 = vlaneseq  ;;  %v267_v13 = vld [vmem:[#allocation5] sm:$0x1]  ;;  %v602_v22 = vmov 0   ;;  %s403_s10 = sshll.u32 %s655_s22, 7 }
  0x55   : > { %579 = vsyncadd (%p873_p4), [#allocation6], 4294967280  ;;  %254 = vadd.xlane.f32.xlu0 %v253_v0  ;;  %v257_v1 = vld [vmem:[%s851_s1] sm:$0xff]  ;;  %464 = vset.pattern.permute.xlu1 %v602_v22  ;;  %s252_s11 = scalar_lea.vmem [#allocation7], %s399_s17  ;;  %s806_s7 = scalar_lea.hbm %s855_s5, %s403_s10 }
  0x56   : > { %v272_v12 = vshrl.u32 %v271_v9, 7  ;;  %v270_v18 = vld [vmem:[%s853_s3] sm:$0xff]  ;;  %465 = vset.pattern.permute.xlu0 %v602_v22  ;;  %s312_s9 = sshll.u32 %s252_s11, 4  ;;  %s299_s23 = scalar_lea.sflag [#allocation4], %s775_s16  ;;  %s808_s9 = int_to_ptr.vmem [resolvable:$true] %s312_s9 }
  0x57   : > { %v279_v23 = vld [vmem:[%s854_s4] sm:$0xff]  ;;  %s528_s27 = scalar_lea.vmem %s808_s9, 128  ;;  %s603_s22 = smov [#allocation7]  }
  0x58   : > { %v273_v16 = vsub.s32 0, %v272_v12  ;;  %p529_p6 = scmp.ne.s32.totalorder %s808_s9, %s528_s27  ;;  %s532_s17 = sshll.u32 %s603_s22, 4  ;;  %s533_s17 = int_to_ptr.vmem [resolvable:$false] %s532_s17 }
  0x59   : > { %s534_s26 = scalar_lea.vmem %s533_s17, 256  ;;  %p535_p13 = scmp.lt.s32.totalorder %s808_s9, %s533_s17 }
  0x5a   : > { %p530_p9 = pnand %p529_p6, %p726_p8  ;;  %p536_p0 = scmp.lt.s32.totalorder %s534_s26, %s528_s27 }
  0x5c   : > { %p531_p12 = pneg %p530_p9  ;;  %p537_p5 = por %p536_p0, %p535_p13 }
  0x5e   : > { %p538_p10 = pnand %p537_p5, %p531_p12 }
  0xe2   : > { %v255_v2 = vpop.xlane.xlu0 %254 }
  0xe3   : > { %v256_v3 = vmul.f32 0.00390625, %v255_v2 }
  0xe5   : > { %v258_v4 = vmul.f32 %v257_v1, %v256_v3 }
  0xe7   : > { %v260_v5 = vsel %vm259_vm0, %v258_v4, 0.0 }
  0xe8   : > { %v261_v6 = vrot.slane %v260_v5, 4 }
  0xea   : > { %v262_v7 = vadd.f32 %v261_v6, %v260_v5 }
  0xec   : > { %v263_v8 = vrot.slane %v262_v7, 2 }
  0xee   : > { %v264_v10 = vadd.f32 %v263_v8, %v262_v7 }
  0xf0   : > { %v265_v11 = vrot.slane %v264_v10, 1 }
  0xf2   : > { %v266_v14 = vadd.f32 %v265_v11, %v264_v10 }
  0xf4   : > { %v268_v15 = vadd.f32 %v267_v13, %v266_v14 }
  0xf6   : > { %v269_v17 = vmax.f32 %v268_v15, 0.0 }
  0xf8   : > { %v274_v19 = vrot.slane %v269_v17, %v273_v16 }
  0xfa   : > { %v275_v20 = vmul.f32 %v274_v19, %v270_v18 }
  0xfc   : > { %v276_v21 = vsel %vm259_vm0, %v275_v20, 0.0 }
  0xfd   : > { %277 = vadd.xlane.f32.xlu0 %v276_v21 }
 0x18a   : > { %v278_v24 = vpop.xlane.xlu0 %277 }
 0x18b   : > { %v280_v25 = vadd.f32 %v279_v23, %v278_v24 }
 0x18d   : > { %v281_v26 = vand.u32 2147483647, %v280_v25  ;;  %vm285_vm1 = vcmp.ge.f32.partialorder %v280_v25, 0.0 }
 0x18f   : > { %v282_v27 = vsub.f32 0.0, %v281_v26 }
 0x191   : > { %v283_v28 = vmul.f32 1.442695, %v282_v27 }
 0x193   : > { %466 = vpow2.f32 %v283_v28 }
 0x19d   : > { %v467_v29 = vpop.eup %466 }
 0x19e   : > { %v286_v30 = vadd.f32 1.0, %v467_v29 }
 0x1a0   : > { %468 = vrcp.f32 %v286_v30 }
 0x1aa   : > { %v469_v31 = vpop.eup %468 }
 0x1ab   : > { %v289_v32 = vmul.f32 %v469_v31, %v467_v29 }
 0x1ad   : > { %v290_v33 = vsel %vm285_vm1, %v469_v31, %v289_v32 }
 0x1ae   : > { %293 = vperm.xlu1 %464, %v290_v33  }
 0x22d   : > { %v294_v34 = vpop.permute.xlu1 %293 }
 0x22e   : > { %v296_v35 = vmul.f32 %v294_v34, %v253_v0 }
 0x230   : > { %297 = vst [vmem:[%s252_s11] sm:$0xff] %v296_v35 }
 0x231   : > { %541 = shalt.err (!%p538_p10)
}
 0x232   : > { %s542_s16 = scalar_lea.hbm %s806_s7, 128  ;;  %s546_s8 = scalar_lea.hbm %s855_s5, 256 }
 0x233   : > { %p543_p1 = scmp.ne.s32.totalorder %s806_s7, %s542_s16  ;;  %p547_p3 = scmp.lt.u32.totalorder %s806_s7, %s855_s5 }
 0x234   : > { %p548_p11 = scmp.lt.u32.totalorder %s546_s8, %s542_s16  ;;  %p550_p6 = scmp.lt.u32.totalorder %s542_s16, %s806_s7 }
 0x235   : > { %p544_p2 = pnand %p543_p1, %p726_p8 }
 0x236   : > { %p549_p4 = por %p548_p11, %p547_p3 }
 0x237   : > { %p545_p7 = pneg %p544_p2 }
 0x238   : > { %p551_p9 = por %p550_p6, %p549_p4 }
 0x23a   : > { %p552_p12 = pnand %p551_p9, %p545_p7 }
 0x23c   : > { %555 = shalt.err (!%p552_p12)
}
 0x23d   : > { %412 = dma.vmem_to_hbm [thread:$0]  (%p726_p8), %s808_s9, 128, %s806_s7, %s299_s23  }
 0x23e PF: > { %s324_s10 = sand.u32 1, %s586_s18   ;;  %p874_p13 = scmp.ne.s32.totalorder %s860_s25, 0 }
 0x23f   : > { %p875_p0 = scmp.ge.s32.totalorder %s598_s21, 2  ;;  %s325_s11 = scalar_lea.sflag [#allocation4], %s324_s10 }
 0x241   : > { %p423_p5 = pnand %p875_p0, %p874_p13 }
 0x243   : > { %581 = dma.done.wait (!%p423_p5), %s325_s11, 128  }
 0x244   : > { %583 = vsyncadd (!%p423_p5), %s325_s11, 4294967168  ;;  %p19_p10 = scmp.ge.s32.totalorder %s682_s29, 4   ;;  %s876_s18 = smov %s590_s19 }
 0x245   : > { %s877_s19 = smov %s594_s20  ;;  %s878_s20 = smov %s718_s6 }
 0x246   : > { %s879_s21 = smov %s682_s29  ;;  %21 = sbr.rel (!%p19_p10) target bundleno = 6 (0x6), region = 89 }
 0x24d   :  { %330 = vsyncpa [#allocation3], 1 }
 0x24e   :  { %332 = vsyncpa [#allocation3 + $0x1], 1 }
 0x24f   :  { %333 = vsyncpa [#allocation6], 1 }
 0x250   :  { %334 = vsyncpa [#allocation4], 1 }
 0x251   :  { %336 = vsyncpa [#allocation4 + $0x1], 1 }

</bundles_post_ra>
